<compile_context>
chip_gen: v6e
topology: v6e:2x2x1
jax: 0.10.0
libtpu: 0.0.40
codegen_flags: <defaults>
</compile_context>

<pallas_src>
import functools

import jax
import jax.numpy as jnp
from jax.experimental import pallas as pl
from jax.experimental.pallas import tpu as pltpu


def _round_up(x: int, m: int) -> int:
    return (x + m - 1) // m * m


def _attention_kernel(fused_ref, v_ref, a_ref, w_ref, b_ref, out_ref, *, p_pad: int):
    """One grid step: (TB, input_dim) @ (input_dim, 2*P) -> gated blend (TB, D)."""
    # Single fused MXU matmul for both projections, f32 accumulate.
    # NOTE: default matmul precision matches the pure-JAX reference; pass
    # precision=jax.lax.Precision.HIGHEST here (and in the reference) if
    # bit-level parity with an fp32 CPU/PyTorch reference is required.
    wv_wa = (
        jnp.dot(fused_ref[...], w_ref[...], preferred_element_type=jnp.float32)
        + b_ref[...].astype(jnp.float32)
    )

    # One row reduction gives sum(w_v) + sum(w_a); padded weight/bias columns
    # are exactly zero so they do not perturb the norm.
    norm = jnp.sum(wv_wa, axis=1, keepdims=True) + jnp.float32(1e-10)

    d = out_ref.shape[1]                      # true (unpadded) output_dim
    w_v = wv_wa[:, :d]
    w_a = wv_wa[:, p_pad:p_pad + d]

    # Reassociated epilogue in f32 (works for bf16-streamed v/a as well;
    # v5e has no bf16 VPU so the upcast is required there anyway).
    combined = (
        w_v * v_ref[...].astype(jnp.float32)
        + w_a * a_ref[...].astype(jnp.float32)
    )
    inv_norm = pl.reciprocal(norm, approx=False)   # exact: norm may be near zero
    out_ref[...] = (combined * inv_norm).astype(out_ref.dtype)


def prepare_attention_params(w1, b1, w2, b2, *, param_dtype=None):
    """One-time parameter prep (do this at init, NOT per forward call).

    w1, w2 : (input_dim, output_dim)   -- PyTorch nn.Linear weight, transposed
    b1, b2 : (output_dim,)

    Returns (w_cat, b_cat) with the output axis zero-padded to a multiple of 128
    and fc1/fc2 concatenated along it.  The zero padding is what keeps the
    in-kernel 2P-wide row-sum equal to the reference norm.
    """
    input_dim, output_dim = w1.shape
    p_pad = _round_up(output_dim, 128)
    pad = p_pad - output_dim

    w_cat = jnp.concatenate(
        [jnp.pad(w1, ((0, 0), (0, pad))), jnp.pad(w2, ((0, 0), (0, pad)))], axis=1
    )                                                       # (input_dim, 2*P)
    b_cat = jnp.concatenate(
        [jnp.pad(b1, (0, pad)), jnp.pad(b2, (0, pad))]
    ).reshape(1, 2 * p_pad)                                 # (1, 2*P)

    if param_dtype is not None:
        w_cat = w_cat.astype(param_dtype)
        b_cat = b_cat.astype(param_dtype)
    return w_cat, b_cat


def attention_mechanism(
    v,
    a,
    fused,
    w_cat,
    b_cat,
    *,
    block_b: int = 2048,
    vmem_budget_bytes: int = 24 << 20,   # conservative: fits v7x (64 MiB physical)
    vmem_limit_bytes: int = 48 << 20,
):
    """Pallas-backed forward of AttentionMechanism.

    v, a        : (B, output_dim)   (any float dtype; bf16 halves HBM traffic)
    fused       : (B, input_dim)
    w_cat,b_cat : outputs of prepare_attention_params (resident in VMEM)
    """
    B, output_dim = v.shape
    input_dim = fused.shape[1]
    two_p = w_cat.shape[1]
    p_pad = two_p // 2
    assert w_cat.shape[0] == input_dim
    assert p_pad == _round_up(output_dim, 128)
    assert b_cat.shape == (1, two_p)

    # ---- VMEM-budget-aware batch tile ----
    # Per grid step (double-buffered): fused + v + a input blocks + output block.
    resident = w_cat.size * w_cat.dtype.itemsize + b_cat.size * b_cat.dtype.itemsize
    row_bytes = 2 * (
        fused.dtype.itemsize * input_dim
        + v.dtype.itemsize * output_dim
        + a.dtype.itemsize * output_dim
        + v.dtype.itemsize * output_dim   # output block
    )
    avail = max(vmem_budget_bytes - 2 * resident, 8 * row_bytes)
    tb = min(block_b, max(8, (avail // row_bytes) // 8 * 8))
    tb = min(tb, _round_up(B, 8))
    # v7x has 2 TensorCores: keep >= 2 grid steps when the batch is big enough
    # to split, so the "parallel" axis actually shards across cores.
    if B >= 1024 and 2 * tb > _round_up(B, 8):
        tb = max(8, _round_up(pl.cdiv(B, 2), 8))
    TB = tb

    grid = (pl.cdiv(B, TB),)   # no batch padding: Pallas masks the partial tail block

    kernel = functools.partial(_attention_kernel, p_pad=p_pad)

    return pl.pallas_call(
        kernel,
        out_shape=jax.ShapeDtypeStruct((B, output_dim), v.dtype),
        grid=grid,
        in_specs=[
            pl.BlockSpec((TB, input_dim), lambda i: (i, 0)),     # fused (streamed)
            pl.BlockSpec((TB, output_dim), lambda i: (i, 0)),    # v     (streamed)
            pl.BlockSpec((TB, output_dim), lambda i: (i, 0)),    # a     (streamed)
            pl.BlockSpec((input_dim, two_p), lambda i: (0, 0)),  # W1|W2 (VMEM-resident)
            pl.BlockSpec((1, two_p), lambda i: (0, 0)),          # b1|b2 (VMEM-resident)
        ],
        out_specs=pl.BlockSpec((TB, output_dim), lambda i: (i, 0)),
        compiler_params=pltpu.CompilerParams(
            dimension_semantics=("parallel",),
            vmem_limit_bytes=vmem_limit_bytes,
        ),
    )(fused, v, a, w_cat, b_cat)


def reference(v, a, fused, w1, b1, w2, b2):
    """Pure-JAX reference matching the PyTorch forward semantics."""
    w_v = fused @ w1 + b1
    w_a = fused @ w2 + b2
    eps = 1e-10
    norm = w_v.sum(axis=1, keepdims=True) + w_a.sum(axis=1, keepdims=True) + eps
    return (w_v / norm) * v + (w_a / norm) * a


if __name__ == "__main__":
    # Small, module-consistent shapes.
    B = 8
    input_dim = 32
    output_dim = 32

    key = jax.random.PRNGKey(0)
    kv, ka, kf, kw1, kb1, kw2, kb2 = jax.random.split(key, 7)

    v = jax.random.normal(kv, (B, output_dim), dtype=jnp.float32)
    a = jax.random.normal(ka, (B, output_dim), dtype=jnp.float32)
    fused = jax.random.normal(kf, (B, input_dim), dtype=jnp.float32)

    # PyTorch-style uniform weight init.  Biases drawn positive so the demo's
    # gating norm stays well away from zero (the module itself allows a
    # near-zero norm; this just keeps the numerical check well-conditioned).
    bound = 1.0 / (input_dim ** 0.5)
    w1 = jax.random.uniform(kw1, (input_dim, output_dim), jnp.float32, -bound, bound)
    w2 = jax.random.uniform(kw2, (input_dim, output_dim), jnp.float32, -bound, bound)
    b1 = jax.random.uniform(kb1, (output_dim,), jnp.float32, 0.5, 1.0)
    b2 = jax.random.uniform(kb2, (output_dim,), jnp.float32, 0.5, 1.0)

    # One-time parameter prep (hoisted out of the per-call path).
    w_cat, b_cat = prepare_attention_params(w1, b1, w2, b2)

    out = attention_mechanism(v, a, fused, w_cat, b_cat)
    out = jax.block_until_ready(out)

    ref = reference(v, a, fused, w1, b1, w2, b2)
    assert out.shape == (B, output_dim)
    max_diff = jnp.max(jnp.abs(out - ref))
    # Tolerance covers the MXU-vs-XLA default matmul precision difference.
    assert jnp.allclose(out, ref, atol=5e-4, rtol=5e-3), f"mismatch: {max_diff}"

    print("KERNEL_OK")
</pallas_src>

<mosaic_0001>
module attributes {stable_mosaic.version = 11 : i64} {
  func.func @_attention_kernel(%arg0: i32, %arg1: memref<8x32xf32, #tpu.memory_space<vmem>>, %arg2: memref<8x32xf32, #tpu.memory_space<vmem>>, %arg3: memref<8x32xf32, #tpu.memory_space<vmem>>, %arg4: memref<32x256xf32, #tpu.memory_space<vmem>>, %arg5: memref<1x256xf32, #tpu.memory_space<vmem>>, %arg6: memref<8x32xf32, #tpu.memory_space<vmem>>) attributes {dimension_semantics = [#tpu.dimension_semantics<parallel>], iteration_bounds = array<i64: 1>, scalar_prefetch = 0 : i64, scratch_operands = 0 : i64, tpu.core_type = #tpu.core_type<tc>, window_params = [{transform_indices = @transform_0, window_bounds = array<i64: 8, 32>}, {transform_indices = @transform_1, window_bounds = array<i64: 8, 32>}, {transform_indices = @transform_2, window_bounds = array<i64: 8, 32>}, {pipeline_mode = #tpu.pipeline_mode<synchronous>, transform_indices = @transform_3, window_bounds = array<i64: 32, 256>}, {pipeline_mode = #tpu.pipeline_mode<synchronous>, transform_indices = @transform_4, window_bounds = array<i64: 1, 256>}, {transform_indices = @transform_5, window_bounds = array<i64: 8, 32>}]} {
    %c0 = arith.constant 0 : index
    %c0_0 = arith.constant 0 : index
    %0 = vector.load %arg1[%c0, %c0_0] : memref<8x32xf32, #tpu.memory_space<vmem>>, vector<8x32xf32>
    %c0_1 = arith.constant 0 : index
    %c0_2 = arith.constant 0 : index
    %1 = vector.load %arg4[%c0_1, %c0_2] : memref<32x256xf32, #tpu.memory_space<vmem>>, vector<32x256xf32>
    %cst = arith.constant dense<0.000000e+00> : vector<8x256xf32>
    %2 = tpu.matmul %0, %1, %cst {dimension_numbers = #tpu.dot_dimension_numbers<[1], [0], [0], [1], [0, 0, 1, 1], [], []>} : vector<8x32xf32>, vector<32x256xf32>, vector<8x256xf32> -> vector<8x256xf32>
    %c0_3 = arith.constant 0 : index
    %c0_4 = arith.constant 0 : index
    %3 = vector.load %arg5[%c0_3, %c0_4] : memref<1x256xf32, #tpu.memory_space<vmem>>, vector<1x256xf32>
    %4 = vector.broadcast %3 : vector<1x256xf32> to vector<8x256xf32>
    %5 = arith.addf %2, %4 : vector<8x256xf32>
    %cst_5 = arith.constant dense<0.000000e+00> : vector<8xf32>
    %6 = vector.multi_reduction <add>, %5, %cst_5 [1] : vector<8x256xf32> to vector<8xf32>
    %7 = vector.shape_cast %6 : vector<8xf32> to vector<8x1xf32>
    %cst_6 = arith.constant 1.000000e-10 : f32
    %8 = vector.broadcast %cst_6 : f32 to vector<8x1xf32>
    %9 = arith.addf %7, %8 : vector<8x1xf32>
    %10 = vector.extract_strided_slice %5 {offsets = [0, 0], sizes = [8, 32], strides = [1, 1]} : vector<8x256xf32> to vector<8x32xf32>
    %11 = vector.extract_strided_slice %5 {offsets = [0, 128], sizes = [8, 32], strides = [1, 1]} : vector<8x256xf32> to vector<8x32xf32>
    %c0_7 = arith.constant 0 : index
    %c0_8 = arith.constant 0 : index
    %12 = vector.load %arg2[%c0_7, %c0_8] : memref<8x32xf32, #tpu.memory_space<vmem>>, vector<8x32xf32>
    %13 = arith.mulf %10, %12 : vector<8x32xf32>
    %c0_9 = arith.constant 0 : index
    %c0_10 = arith.constant 0 : index
    %14 = vector.load %arg3[%c0_9, %c0_10] : memref<8x32xf32, #tpu.memory_space<vmem>>, vector<8x32xf32>
    %15 = arith.mulf %11, %14 : vector<8x32xf32>
    %16 = arith.addf %13, %15 : vector<8x32xf32>
    %17 = tpu.reciprocal %9 : vector<8x1xf32> -> vector<8x1xf32>
    %18 = vector.broadcast %17 : vector<8x1xf32> to vector<8x32xf32>
    %19 = arith.mulf %16, %18 : vector<8x32xf32>
    %c0_11 = arith.constant 0 : index
    %c0_12 = arith.constant 0 : index
    %20 = vector.load %arg6[%c0_11, %c0_12] : memref<8x32xf32, #tpu.memory_space<vmem>>, vector<8x32xf32>
    tpu.vector_store %arg6[%c0_11, %c0_12], %19 {strides = array<i32>} : memref<8x32xf32, #tpu.memory_space<vmem>>, vector<8x32xf32>,
    return
  }
  func.func @transform_0(%arg0: i32) -> (i32, i32) {
    %c0_i32 = arith.constant 0 : i32
    %c0_i32_0 = arith.constant 0 : i32
    return %arg0, %c0_i32 : i32, i32
  }
  func.func @transform_1(%arg0: i32) -> (i32, i32) {
    %c0_i32 = arith.constant 0 : i32
    %c0_i32_0 = arith.constant 0 : i32
    return %arg0, %c0_i32 : i32, i32
  }
  func.func @transform_2(%arg0: i32) -> (i32, i32) {
    %c0_i32 = arith.constant 0 : i32
    %c0_i32_0 = arith.constant 0 : i32
    return %arg0, %c0_i32 : i32, i32
  }
  func.func @transform_3(%arg0: i32) -> (i32, i32) {
    %c0_i32 = arith.constant 0 : i32
    %c0_i32_0 = arith.constant 0 : i32
    %c0_i32_1 = arith.constant 0 : i32
    return %c0_i32, %c0_i32_0 : i32, i32
  }
  func.func @transform_4(%arg0: i32) -> (i32, i32) {
    %c0_i32 = arith.constant 0 : i32
    %c0_i32_0 = arith.constant 0 : i32
    %c0_i32_1 = arith.constant 0 : i32
    return %c0_i32, %c0_i32_0 : i32, i32
  }
  func.func @transform_5(%arg0: i32) -> (i32, i32) {
    %c0_i32 = arith.constant 0 : i32
    %c0_i32_0 = arith.constant 0 : i32
    return %arg0, %c0_i32 : i32, i32
  }
}

</mosaic_0001>

<bundles_post_ra>
// kernel: tpu_custom_call.1
= control target key start
LH: loop header
LB: loop body
LE: loop exit
PB: predicated region body
PF: predicated region fallthrough
CT: control target
= control target key end

     0   :  { %10 = vsyncpa [#allocation3], 0  ;;  %s372_s0 = inlined_call_operand.hbm [shape: f32[8,32], index: 0, kind: input, shape index: {}]   ;;  %s373_s1 = inlined_call_operand.hbm [shape: f32[8,32], index: 1, kind: input, shape index: {}]   ;;  %s374_s2 = inlined_call_operand.hbm [shape: f32[8,32], index: 2, kind: input, shape index: {}]   ;;  %s375_s3 = inlined_call_operand.hbm [shape: f32[32,256], index: 3, kind: input, shape index: {}]   ;;  %s376_s4 = inlined_call_operand.vmem [shape: f32[1,256], index: 4, kind: input, shape index: {}]   ;;  %s377_s5 = inlined_call_operand.hbm [shape: f32[8,32], index: 5, kind: output, shape index: {}]  }
   0x1   :  { %11 = vsyncpa [#allocation6], 0 }
   0x2   :  { %12 = vsyncpa [#allocation9], 0 }
   0x3   :  { %13 = vsyncpa [#allocation4], 0  ;;  %s314_s18 = smov [#allocation5]   ;;  %s315_s20 = smov [#allocation2]  }
   0x4   :  { %s30_s19 = sshll.u32 %s314_s18, 4  ;;  %s20_s21 = sshll.u32 %s315_s20, 4  ;;  %s31_s19 = int_to_ptr.vmem [resolvable:$true] %s30_s19  ;;  %s21_s21 = int_to_ptr.vmem [resolvable:$true] %s20_s21 }
   0x5   :  { %s214_s22 = scalar_lea.vmem %s31_s19, 128  ;;  %p219_p1 = scmp.lt.s32.totalorder %s31_s19, %s31_s19 }
   0x6   :  { %p215_p0 = scmp.ne.s32.totalorder %s31_s19, %s214_s22  ;;  %p220_p2 = scmp.lt.s32.totalorder %s214_s22, %s214_s22 }
   0x8   :  { %p221_p3 = por %p220_p2, %p219_p1 }
   0xa   :  { %p222_p4 = pnand %p221_p3, %p215_p0 }
   0xc   :  { %225 = shalt.err (!%p222_p4)
}
   0xd   :  { %33 = dma.hbm_to_vmem [thread:$0]  %s373_s1, 128, %s31_s19, [#allocation6]  }
   0xe   :  { %s234_s25 = scalar_lea.vmem %s21_s21, 128  ;;  %p239_p6 = scmp.lt.s32.totalorder %s21_s21, %s21_s21 }
   0xf   :  { %p235_p5 = scmp.ne.s32.totalorder %s21_s21, %s234_s25  ;;  %p240_p7 = scmp.lt.s32.totalorder %s234_s25, %s234_s25 }
  0x11   :  { %p241_p8 = por %p240_p7, %p239_p6 }
  0x13   :  { %p242_p9 = pnand %p241_p8, %p235_p5 }
  0x15   :  { %245 = shalt.err (!%p242_p9)
}
  0x16   :  { %23 = dma.hbm_to_vmem [thread:$0]  %s372_s0, 128, %s21_s21, [#allocation3]  }
  0x17   :  { %s316_s28 = smov [#allocation7]   ;;  %s317_s30 = smov [#allocation8]  }
  0x18   :  { %s40_s29 = sshll.u32 %s316_s28, 4  ;;  %s49_s6 = sshll.u32 %s317_s30, 4  ;;  %s41_s29 = int_to_ptr.vmem [resolvable:$true] %s40_s29  ;;  %s50_s6 = int_to_ptr.vmem [resolvable:$true] %s49_s6 }
  0x19   :  { %s254_s7 = scalar_lea.vmem %s41_s29, 128  ;;  %p259_p11 = scmp.lt.s32.totalorder %s41_s29, %s41_s29 }
  0x1a   :  { %p255_p10 = scmp.ne.s32.totalorder %s41_s29, %s254_s7  ;;  %p260_p12 = scmp.lt.s32.totalorder %s254_s7, %s254_s7 }
  0x1c   :  { %p261_p13 = por %p260_p12, %p259_p11 }
  0x1e   :  { %p262_p0 = pnand %p261_p13, %p255_p10 }
  0x20   :  { %265 = shalt.err (!%p262_p0)
}
  0x21   :  { %43 = dma.hbm_to_vmem [thread:$0]  %s374_s2, 128, %s41_s29, [#allocation6]  }
  0x22   :  { %s274_s9 = scalar_lea.vmem %s50_s6, 1024  ;;  %p279_p2 = scmp.lt.s32.totalorder %s50_s6, %s50_s6 }
  0x23   :  { %p275_p1 = scmp.ne.s32.totalorder %s50_s6, %s274_s9  ;;  %p280_p3 = scmp.lt.s32.totalorder %s274_s9, %s274_s9 }
  0x25   :  { %p281_p4 = por %p280_p3, %p279_p2 }
  0x27   :  { %p282_p5 = pnand %p281_p4, %p275_p1 }
  0x29   :  { %285 = shalt.err (!%p282_p5)
}
  0x2a   :  { %s318_s0 = smov 256   ;;  %s319_s10 = smov 16  }
  0x2b   :  { %55 = dma.hbm_to_vmem [thread:$0]  %s375_s3, 1024, %s50_s6, [#allocation9], %s318_s0, %s318_s0, %s319_s10  }
  0x2c   :  { %306 = dma.done.wait [#allocation3], 128  }
  0x2d   :  { %307 = vsyncadd [#allocation3], 4294967168 }
  0x2e   :  { %308 = dma.done.wait [#allocation6], 256  }
  0x2f   :  { %309 = vsyncadd [#allocation6], 4294967040 }
  0x30   :  { %310 = dma.done.wait [#allocation9], 1024  }
  0x31   :  { %311 = vsyncadd [#allocation9], 4294966272  ;;  %v320_v0 = vmov 0.0   ;;  %v78_v1 = vld [vmem:[#allocation8 + $0x38] sm:$0xff]  ;;  %v77_v2 = vld [vmem:[#allocation8 + $0x30] sm:$0xff]  ;;  %vm91_vm0 = vcmask 261120   ;;  %v81_v10 = vlaneseq }
  0x32   :  { %159 = vmatprep.mubr.f32.mxu0 %v320_v0  ;;  %v76_v3 = vld [vmem:[#allocation8 + $0x28] sm:$0xff]  ;;  %119 = vmatprep.subr.mxu0 %v78_v1  ;;  %v75_v4 = vld [vmem:[#allocation8 + $0x20] sm:$0xff]  ;;  %v74_v5 = vld [vmem:[#allocation8 + $0x18] sm:$0xff]  ;;  %s321_s13 = smov [#allocation10]  }
  0x33   :  { %120 = vmatpush1.msra.mxu0 %v77_v2  ;;  %v73_v6 = vld [vmem:[#allocation8 + $0x10] sm:$0xff]  ;;  %v72_v7 = vld [vmem:[#allocation8 + $0x8] sm:$0xff]  ;;  %v71_v8 = vld [vmem:[#allocation8] sm:$0xff]  ;;  %v82_v11 = vshrl.u32 %v81_v10, 7  ;;  %s184_s14 = sshll.u32 %s321_s13, 4  ;;  %s185_s14 = int_to_ptr.vmem [resolvable:$true] %s184_s14 }
  0x34   :  { %121 = vmatprep.subr.mxu0 %v76_v3  ;;  %v70_v9 = vld [vmem:[#allocation2] sm:$0xff]  ;;  %v170_v19 = vld [vmem:[#allocation5] sm:$0xff]  ;;  %v172_v21 = vld [vmem:[#allocation7] sm:$0xff]  ;;  %p291_p7 = scmp.lt.s32.totalorder %s185_s14, %s185_s14 }
  0x35   :  { %122 = vmatpush1.msra.mxu0 %v75_v4  ;;  %v83_v12 = vsub.s32 0, %v82_v11  ;;  %v79_v13 = vld [vmem:[%s376_s4] sm:$0x3]  ;;  %v87_v14 = vsub.s32 1, %v82_v11  ;;  %s286_s4 = scalar_lea.vmem %s185_s14, 128 }
  0x36   :  { %123 = vmatprep.subr.mxu0 %v74_v5  ;;  %p287_p6 = scmp.ne.s32.totalorder %s185_s14, %s286_s4  ;;  %p292_p8 = scmp.lt.s32.totalorder %s286_s4, %s286_s4 }
  0x37   :  { %124 = vmatpush1.msra.mxu0 %v73_v6  ;;  %v84_v15 = vrot.slane %v79_v13, %v83_v12  ;;  %v88_v16 = vrot.slane %v79_v13, %v87_v14 }
  0x38   :  { %125 = vmatprep.subr.mxu0 %v72_v7  ;;  %p293_p9 = por %p292_p8, %p291_p7 }
  0x39   :  { %126 = vmatpush1.msra.mxu0 %v71_v8 }
  0x3a   :  { %195 = vmatmul.mubr.msk.f32.vlgmr.msra.gmra.mxu0 %vm91_vm0, %v70_v9  ;;  %p294_p10 = pnand %p293_p9, %p287_p6 }
  0xfa   :  { %v161_v17 = vpop.f32.mrf.mxu0 }
  0xfb   :  { %v162_v18 = vadd.f32 %v161_v17, %v84_v15 }
  0xfc   :  { %v163_v20 = vpop.f32.mrf.mxu0 }
  0xfd   :  { %v164_v22 = vadd.f32 %v163_v20, %v88_v16  ;;  %v171_v23 = vmul.f32 %v170_v19, %v162_v18 }
  0xff   :  { %v173_v24 = vmul.f32 %v172_v21, %v164_v22  ;;  %v166_v25 = vadd.f32 %v164_v22, %v162_v18 }
 0x101   :  { %v174_v26 = vadd.f32 %v173_v24, %v171_v23  ;;  %167 = vadd.xlane.f32.xlu0 %v166_v25 }
 0x18a   :  { %v168_v27 = vpop.xlane.xlu0 %167 }
 0x18b   :  { %v169_v28 = vadd.f32 1e-10, %v168_v27 }
 0x18d   :  { %204 = vrcp.f32 %v169_v28 }
 0x19a   :  { %v205_v29 = vpop.eup %204 }
 0x19b   :  { %v176_v30 = vmul.f32 %v205_v29, %v174_v26 }
 0x19d   :  { %177 = vst.msk [vmem:[#allocation10] sm:$0xff] %vm91_vm0, %v176_v30 }
 0x19e   :  { %297 = shalt.err (!%p294_p10)
}
 0x19f   :  { %187 = dma.vmem_to_hbm [thread:$0]  %s185_s14, 128, %s377_s5, [#allocation4]  }
 0x1a0   :  { %312 = dma.done.wait [#allocation4], 128  }
 0x1a1   :  { %313 = vsyncadd [#allocation4], 4294967168 }
 0x1a2   :  { %191 = vsyncpa [#allocation3], 1 }
 0x1a3   :  { %192 = vsyncpa [#allocation6], 1 }
 0x1a4   :  { %193 = vsyncpa [#allocation9], 1 }
 0x1a5   :  { %194 = vsyncpa [#allocation4], 1 }

</bundles_post_ra>
